<compile_context>
chip_gen: v7x
topology: tpu7x:2x2x1
jax: 0.10.0
libtpu: 0.0.40
codegen_flags: <defaults>
</compile_context>

<pallas_src>
import functools
import math

import jax
import jax.numpy as jnp
from jax import lax
from jax.experimental import pallas as pl
from jax.experimental.pallas import tpu as pltpu

_LOG2E = 1.4426950408889634
_MASK_NEG = -1e30  # finite "masked" value: fully-masked rows give a near-uniform
                   # softmax instead of NaN (deliberate deviation from PyTorch).


# ---------------------------------------------------------------------------
# helpers
# ---------------------------------------------------------------------------

def _sublane_multiple(dtype):
    """Minimum second-minor tile multiple for a dtype (8 f32 / 16 bf16 / 32 i8)."""
    return {4: 8, 2: 16, 1: 32}.get(jnp.dtype(dtype).itemsize, 8)


def _pick_tile(dim, target, multiple):
    """Largest t <= target with t % multiple == 0 and dim % t == 0, else full dim."""
    if dim <= target:
        return dim
    t = (target // multiple) * multiple
    while t >= multiple:
        if dim % t == 0:
            return t
        t -= multiple
    return dim  # awkward size -> full extent (always a legal block)


def _vmem_limit_bytes(n_bytes):
    """Scoped-VMEM request: generous headroom, capped at physical capacity."""
    try:
        cap = int(pltpu.get_tpu_info().vmem_capacity_bytes)
    except Exception:  # pragma: no cover - conservative fallback (v7x-sized)
        cap = 64 * 1024 * 1024
    ceiling = (cap * 7) // 8
    return int(min(ceiling, max(32 * 1024 * 1024, 2 * n_bytes)))


# ---------------------------------------------------------------------------
# flash-style kernel (no attention-weights output)
# ---------------------------------------------------------------------------

def _flash_attention_kernel(*refs, scale_log2e, is_causal, mask_kind,
                            exp_dtype, exact_recip):
    if mask_kind is None:
        q_ref, k_ref, v_ref, o_ref, m_sc, l_sc, acc_sc = refs
        b_ref = None
    else:
        q_ref, k_ref, v_ref, b_ref, o_ref, m_sc, l_sc, acc_sc = refs

    qi = pl.program_id(1)
    kv = pl.program_id(2)
    tq = q_ref.shape[0]
    tk = k_ref.shape[0]

    @pl.when(kv == 0)
    def _init():
        m_sc[...] = jnp.full(m_sc.shape, -jnp.inf, dtype=m_sc.dtype)
        l_sc[...] = jnp.zeros(l_sc.shape, dtype=l_sc.dtype)
        acc_sc[...] = jnp.zeros(acc_sc.shape, dtype=acc_sc.dtype)

    def _compute(apply_causal):
        # 1/sqrt(d) * log2(e) folded into Q: softmax is done with exp2.
        q = q_ref[...] * jnp.asarray(scale_log2e, dtype=q_ref.dtype)
        # (tq, D) x (tk, D) contracted on D -> (tq, tk), f32 accumulation.
        s = lax.dot_general(q, k_ref[...], (((1,), (1,)), ((), ())),
                            preferred_element_type=jnp.float32)
        if mask_kind == "bool":
            valid = b_ref[...].astype(jnp.float32) > 0.0
            s = jnp.where(valid, s, _MASK_NEG)
        elif mask_kind == "additive":
            s = s + b_ref[...].astype(jnp.float32) * _LOG2E
        if apply_causal:
            row = lax.broadcasted_iota(jnp.int32, (tq, tk), 0) + qi * tq
            col = lax.broadcasted_iota(jnp.int32, (tq, tk), 1) + kv * tk
            s = jnp.where(col <= row, s, -jnp.inf)

        m_prev = m_sc[...]
        m_new = jnp.maximum(m_prev, jnp.max(s, axis=-1, keepdims=True))
        alpha = jnp.exp2(m_prev - m_new)
        x = s - m_new
        if jnp.dtype(exp_dtype) != jnp.dtype(jnp.float32):
            x = x.astype(exp_dtype)         # bf16 exp on the EUP (v6e/v7x)
        p = jnp.exp2(x)
        l_sc[...] = alpha * l_sc[...] + jnp.sum(
            p.astype(jnp.float32), axis=-1, keepdims=True)
        acc_sc[...] = alpha * acc_sc[...] + lax.dot_general(
            p.astype(v_ref.dtype), v_ref[...], (((1,), (0,)), ((), ())),
            preferred_element_type=jnp.float32)
        m_sc[...] = m_new

    if is_causal:
        needed = kv * tk < (qi + 1) * tq              # tile has >=1 valid col
        interior = (kv * tk + (tk - 1)) <= qi * tq    # fully below the diagonal

        @pl.when(needed & interior)
        def _unmasked():
            _compute(False)

        @pl.when(needed & jnp.logical_not(interior))
        def _masked():
            _compute(True)
    else:
        _compute(False)

    @pl.when(kv == pl.num_programs(2) - 1)
    def _finalize():
        inv = pl.reciprocal(l_sc[...], approx=not exact_recip)
        o_ref[...] = (acc_sc[...] * inv).astype(o_ref.dtype)


def _flash_attention(q, k, v, bias, mask_kind, scale, is_causal,
                     tq_target=512, tk_target=512):
    B, Sq, D = q.shape
    _, Sk, _ = k.shape

    sub_q = _sublane_multiple(q.dtype)
    if mask_kind is not None:
        sub_q = max(sub_q, _sublane_multiple(bias.dtype))
    tq = _pick_tile(Sq, tq_target, sub_q)
    tk = _pick_tile(Sk, tk_target, 128)   # lane-dense score tiles / MXU-aligned P.V
    nq = Sq // tq
    nk = Sk // tk

    exp_dtype = (jnp.bfloat16 if jnp.dtype(v.dtype) == jnp.dtype(jnp.bfloat16)
                 else jnp.float32)
    exact_recip = bool(jnp.dtype(q.dtype) == jnp.dtype(jnp.float32))

    kernel = functools.partial(
        _flash_attention_kernel, scale_log2e=scale * _LOG2E,
        is_causal=bool(is_causal), mask_kind=mask_kind,
        exp_dtype=exp_dtype, exact_recip=exact_recip)

    if is_causal:
        # Clamp the kv block index to the last tile this qi actually needs, so
        # fully-skipped grid steps revisit the resident block and issue no DMA.
        def kv_map(b, qi, kv, _tq=tq, _tk=tk):
            last = ((qi + 1) * _tq - 1) // _tk
            return (b, jnp.minimum(kv, last), 0)

        def bias_map(b, qi, kv, _tq=tq, _tk=tk):
            last = ((qi + 1) * _tq - 1) // _tk
            return (b, qi, jnp.minimum(kv, last))
    else:
        kv_map = lambda b, qi, kv: (b, kv, 0)
        bias_map = lambda b, qi, kv: (b, qi, kv)

    in_specs = [
        pl.BlockSpec((None, tq, D), lambda b, qi, kv: (b, qi, 0)),
        pl.BlockSpec((None, tk, D), kv_map),
        pl.BlockSpec((None, tk, D), kv_map),
    ]
    inputs = [q, k, v]
    if mask_kind is not None:
        in_specs.append(pl.BlockSpec((None, tq, tk), bias_map))
        inputs.append(bias)

    it = jnp.dtype(q.dtype).itemsize
    n_bytes = 2 * it * (tq * D + 2 * tk * D)        # double-buffered q/k/v
    n_bytes += 2 * it * tq * D                      # output double buffer
    n_bytes += 4 * tq * (D + 2 * 128)               # f32 scratch (acc, m, l padded)
    n_bytes += 3 * 4 * tq * tk                      # f32 s/p temporaries
    if mask_kind is not None:
        n_bytes += 2 * jnp.dtype(bias.dtype).itemsize * tq * tk

    return pl.pallas_call(
        kernel,
        out_shape=jax.ShapeDtypeStruct((B, Sq, D), q.dtype),
        grid_spec=pltpu.PrefetchScalarGridSpec(
            num_scalar_prefetch=0,
            grid=(B, nq, nk),
            in_specs=in_specs,
            out_specs=pl.BlockSpec((None, tq, D), lambda b, qi, kv: (b, qi, 0)),
            scratch_shapes=[
                pltpu.VMEM((tq, 1), jnp.float32),   # running max m (log2 domain)
                pltpu.VMEM((tq, 1), jnp.float32),   # running denom l
                pltpu.VMEM((tq, D), jnp.float32),   # output accumulator
            ],
        ),
        compiler_params=pltpu.CompilerParams(
            dimension_semantics=("parallel", "parallel", "arbitrary"),
            vmem_limit_bytes=_vmem_limit_bytes(n_bytes),
        ),
    )(*inputs)


# ---------------------------------------------------------------------------
# variant that also returns the full attention matrix
# ---------------------------------------------------------------------------

def _attention_weights_kernel(*refs, scale_log2e, is_causal, mask_kind):
    if mask_kind is None:
        q_ref, k_ref, v_ref, o_ref, attn_ref = refs
        b_ref = None
    else:
        q_ref, k_ref, v_ref, b_ref, o_ref, attn_ref = refs

    qi = pl.program_id(1)
    tq = q_ref.shape[0]
    sk = k_ref.shape[0]

    q = q_ref[...] * jnp.asarray(scale_log2e, dtype=q_ref.dtype)
    s = lax.dot_general(q, k_ref[...], (((1,), (1,)), ((), ())),
                        preferred_element_type=jnp.float32)
    if mask_kind == "bool":
        valid = b_ref[...].astype(jnp.float32) > 0.0
        s = jnp.where(valid, s, _MASK_NEG)
    elif mask_kind == "additive":
        s = s + b_ref[...].astype(jnp.float32) * _LOG2E
    if is_causal:
        row = lax.broadcasted_iota(jnp.int32, (tq, sk), 0) + qi * tq
        col = lax.broadcasted_iota(jnp.int32, (tq, sk), 1)
        s = jnp.where(col <= row, s, -jnp.inf)

    m = jnp.max(s, axis=-1, keepdims=True)
    p = jnp.exp2(s - m)
    denom = jnp.sum(p, axis=-1, keepdims=True)
    attn = p * pl.reciprocal(denom, approx=False)        # exact for the weights
    o = lax.dot_general(attn.astype(v_ref.dtype), v_ref[...],
                        (((1,), (0,)), ((), ())),
                        preferred_element_type=jnp.float32)

    o_ref[...] = o.astype(o_ref.dtype)
    attn_ref[...] = attn.astype(attn_ref.dtype)


def _attention_with_weights(q, k, v, bias, mask_kind, scale, is_causal,
                            tq_target=256):
    B, Sq, D = q.shape
    _, Sk, _ = k.shape

    sub_q = _sublane_multiple(q.dtype)
    if mask_kind is not None:
        sub_q = max(sub_q, _sublane_multiple(bias.dtype))

    it = jnp.dtype(q.dtype).itemsize
    mask_it = jnp.dtype(bias.dtype).itemsize if mask_kind is not None else 0

    # Keep the full-Sk working set well under v7x's 64 MiB VMEM.
    budget = 40 * 1024 * 1024
    tq = _pick_tile(Sq, tq_target, sub_q)
    while True:
        ws = 2 * Sk * D * it                 # K + V (single-buffered)
        ws += 2 * tq * D * it                # Q double buffer
        ws += 2 * tq * D * it                # out double buffer
        ws += 2 * tq * Sk * it               # attn output double buffer
        ws += 2 * tq * Sk * 4                # f32 s / p temporaries
        ws += 2 * tq * Sk * mask_it
        if (ws <= budget or tq <= sub_q
                or Sq % (tq // 2) != 0 or (tq // 2) % sub_q != 0):
            break
        tq //= 2
    nq = Sq // tq

    kernel = functools.partial(
        _attention_weights_kernel, scale_log2e=scale * _LOG2E,
        is_causal=bool(is_causal), mask_kind=mask_kind)

    # K/V block index is constant across qi -> single buffering loses nothing.
    in_specs = [
        pl.BlockSpec((None, tq, D), lambda b, qi: (b, qi, 0)),
        pl.BlockSpec((None, Sk, D), lambda b, qi: (b, 0, 0),
                     pipeline_mode=pl.Buffered(1)),
        pl.BlockSpec((None, Sk, D), lambda b, qi: (b, 0, 0),
                     pipeline_mode=pl.Buffered(1)),
    ]
    inputs = [q, k, v]
    if mask_kind is not None:
        in_specs.append(pl.BlockSpec((None, tq, Sk), lambda b, qi: (b, qi, 0)))
        inputs.append(bias)

    out, attn = pl.pallas_call(
        kernel,
        out_shape=(
            jax.ShapeDtypeStruct((B, Sq, D), q.dtype),
            jax.ShapeDtypeStruct((B, Sq, Sk), q.dtype),   # weights in input dtype
        ),
        grid_spec=pltpu.PrefetchScalarGridSpec(
            num_scalar_prefetch=0,
            grid=(B, nq),
            in_specs=in_specs,
            out_specs=[
                pl.BlockSpec((None, tq, D), lambda b, qi: (b, qi, 0)),
                pl.BlockSpec((None, tq, Sk), lambda b, qi: (b, qi, 0)),
            ],
        ),
        compiler_params=pltpu.CompilerParams(
            dimension_semantics=("parallel", "parallel"),
            vmem_limit_bytes=_vmem_limit_bytes(ws),
        ),
    )(*inputs)
    return out, attn


# ---------------------------------------------------------------------------
# module wrapper
# ---------------------------------------------------------------------------

class StandardAttention:
    """JAX/Pallas port of the PyTorch StandardAttention module (eval mode)."""

    def __init__(self, d_model: int, dropout: float = 0.1):
        self.d_model = d_model
        self.dropout = dropout              # unused at inference (p = 0)
        self.scale = 1.0 / math.sqrt(d_model)
        # TODO(synk): training-mode dropout on the attention weights is not
        # implemented (module uses p=0 in eval mode).

    def __call__(self, query, key, value, mask=None, is_causal=False,
                 return_attention=False):
        B, Sq, D = query.shape
        _, Sk, _ = key.shape
        assert value.shape == (B, Sk, D)

        if mask is None:
            bias, mask_kind = None, None
        elif jnp.dtype(mask.dtype) == jnp.dtype(jnp.bool_):
            # Stream the boolean mask as int8 (1 byte/elem); the -1e30
            # conversion happens inside the kernel. Fully-masked rows give a
            # near-uniform softmax rather than NaN (deliberate deviation).
            bias = jnp.broadcast_to(mask, (B, Sq, Sk)).astype(jnp.int8)
            mask_kind = "bool"
        else:
            b = mask if jnp.issubdtype(mask.dtype, jnp.floating) \
                else mask.astype(jnp.float32)
            bias = jnp.broadcast_to(b, (B, Sq, Sk))   # keep the user's dtype
            mask_kind = "additive"

        if return_attention:
            return _attention_with_weights(query, key, value, bias, mask_kind,
                                           self.scale, is_causal)
        out = _flash_attention(query, key, value, bias, mask_kind,
                               self.scale, is_causal)
        return out, None


# ---------------------------------------------------------------------------
# reference + self-test
# ---------------------------------------------------------------------------

def _reference(q, k, v, mask, scale, is_causal):
    s = jnp.einsum("bqd,bkd->bqk", q.astype(jnp.float32),
                   k.astype(jnp.float32)) * scale
    if mask is not None:
        if mask.dtype == jnp.bool_:
            s = jnp.where(mask, s, _MASK_NEG)
        else:
            s = s + mask.astype(jnp.float32)
    if is_causal:
        sq, sk = s.shape[1], s.shape[2]
        causal = jnp.tril(jnp.ones((sq, sk), dtype=bool))
        s = jnp.where(causal[None], s, -jnp.inf)
    a = jax.nn.softmax(s, axis=-1)
    o = jnp.einsum("bqk,bkd->bqd", a, v.astype(jnp.float32))
    return o.astype(q.dtype), a


if __name__ == "__main__":
    B, S, D = 2, 8, 32  # batch=2, seq=8, d_model=32
    key0 = jax.random.PRNGKey(0)
    kq, kk, kv_, km, kb = jax.random.split(key0, 5)
    q = jax.random.normal(kq, (B, S, D), dtype=jnp.float32)
    k = jax.random.normal(kk, (B, S, D), dtype=jnp.float32)
    v = jax.random.normal(kv_, (B, S, D), dtype=jnp.float32)

    attn_mod = StandardAttention(d_model=D, dropout=0.1)

    # 1) causal + return_attention=True  (weights-variant kernel)
    out, w = attn_mod(q, k, v, is_causal=True, return_attention=True)
    jax.block_until_ready(out)
    jax.block_until_ready(w)
    ref_o, ref_w = _reference(q, k, v, None, attn_mod.scale, True)
    assert jnp.allclose(out, ref_o, atol=2e-4, rtol=2e-4)
    assert jnp.allclose(w, ref_w.astype(w.dtype), atol=2e-4, rtol=2e-4)

    # 2) causal, no weights  (flash kernel, causal tile skipping)
    out2, none_w = attn_mod(q, k, v, is_causal=True, return_attention=False)
    jax.block_until_ready(out2)
    assert none_w is None
    assert jnp.allclose(out2, ref_o, atol=5e-3, rtol=5e-3)

    # 3) non-causal with a boolean mask  (flash kernel, int8 mask stream)
    mask = jax.random.bernoulli(km, 0.8, (B, S, S))
    mask = mask.at[:, :, 0].set(True)        # keep every query row attendable
    out3, _ = attn_mod(q, k, v, mask=mask, is_causal=False)
    jax.block_until_ready(out3)
    ref_o3, _ = _reference(q, k, v, mask, attn_mod.scale, False)
    assert jnp.allclose(out3, ref_o3, atol=5e-3, rtol=5e-3)

    # 4) non-causal with an additive float bias  (flash kernel, additive path)
    bias_add = 0.5 * jax.random.normal(kb, (B, S, S), dtype=jnp.float32)
    out4, _ = attn_mod(q, k, v, mask=bias_add, is_causal=False)
    jax.block_until_ready(out4)
    ref_o4, _ = _reference(q, k, v, bias_add, attn_mod.scale, False)
    assert jnp.allclose(out4, ref_o4, atol=5e-3, rtol=5e-3)

    # 5) larger multi-tile causal path  (clamped K/V index_map + tile skipping)
    B2, S2, D2 = 1, 1024, 128
    kq2, kk2, kv2 = jax.random.split(jax.random.PRNGKey(1), 3)
    q2 = jax.random.normal(kq2, (B2, S2, D2), dtype=jnp.float32)
    k2 = jax.random.normal(kk2, (B2, S2, D2), dtype=jnp.float32)
    v2 = jax.random.normal(kv2, (B2, S2, D2), dtype=jnp.float32)
    mod2 = StandardAttention(d_model=D2)
    out5, _ = mod2(q2, k2, v2, is_causal=True)
    jax.block_until_ready(out5)
    ref_o5, _ = _reference(q2, k2, v2, None, mod2.scale, True)
    assert jnp.allclose(out5, ref_o5, atol=5e-3, rtol=5e-3)

    # 6) bf16 inputs, causal flash  (bf16 exp2 / EUP path)
    B3, S3, D3 = 1, 256, 128
    kq3, kk3, kv3 = jax.random.split(jax.random.PRNGKey(2), 3)
    q3 = jax.random.normal(kq3, (B3, S3, D3), dtype=jnp.bfloat16)
    k3 = jax.random.normal(kk3, (B3, S3, D3), dtype=jnp.bfloat16)
    v3 = jax.random.normal(kv3, (B3, S3, D3), dtype=jnp.bfloat16)
    mod3 = StandardAttention(d_model=D3)
    out6, _ = mod3(q3, k3, v3, is_causal=True)
    jax.block_until_ready(out6)
    ref_o6, _ = _reference(q3, k3, v3, None, mod3.scale, True)
    assert jnp.allclose(out6.astype(jnp.float32), ref_o6.astype(jnp.float32),
                        atol=3e-2, rtol=3e-2)

    print("KERNEL_OK")
</pallas_src>

<mosaic_0001>
module attributes {stable_mosaic.version = 11 : i64} {
  func.func @_attention_weights_kernel(%arg0: i32, %arg1: i32, %arg2: memref<1x8x32xf32, #tpu.memory_space<vmem>>, %arg3: memref<1x8x32xf32, #tpu.memory_space<vmem>>, %arg4: memref<1x8x32xf32, #tpu.memory_space<vmem>>, %arg5: memref<1x8x32xf32, #tpu.memory_space<vmem>>, %arg6: memref<1x8x8xf32, #tpu.memory_space<vmem>>) attributes {dimension_semantics = [#tpu.dimension_semantics<parallel>, #tpu.dimension_semantics<parallel>], iteration_bounds = array<i64: 2, 1>, scalar_prefetch = 0 : i64, scratch_operands = 0 : i64, tpu.core_type = #tpu.core_type<tc>, window_params = [{transform_indices = @transform_0, window_bounds = array<i64: 1, 8, 32>}, {pipeline_mode = #tpu.pipeline_mode<synchronous>, transform_indices = @transform_1, window_bounds = array<i64: 1, 8, 32>}, {pipeline_mode = #tpu.pipeline_mode<synchronous>, transform_indices = @transform_2, window_bounds = array<i64: 1, 8, 32>}, {transform_indices = @transform_3, window_bounds = array<i64: 1, 8, 32>}, {transform_indices = @transform_4, window_bounds = array<i64: 1, 8, 8>}]} {
    %c0 = arith.constant 0 : index
    %c0_0 = arith.constant 0 : index
    %c0_1 = arith.constant 0 : index
    %0 = vector.load %arg2[%c0, %c0_0, %c0_1] : memref<1x8x32xf32, #tpu.memory_space<vmem>>, vector<1x8x32xf32>
    %1 = vector.shape_cast %0 : vector<1x8x32xf32> to vector<8x32xf32>
    %cst = arith.constant 0.255034864 : f32
    %2 = vector.broadcast %cst : f32 to vector<8x32xf32>
    %3 = arith.mulf %1, %2 : vector<8x32xf32>
    %c0_2 = arith.constant 0 : index
    %c0_3 = arith.constant 0 : index
    %c0_4 = arith.constant 0 : index
    %4 = vector.load %arg3[%c0_2, %c0_3, %c0_4] : memref<1x8x32xf32, #tpu.memory_space<vmem>>, vector<1x8x32xf32>
    %5 = vector.shape_cast %4 : vector<1x8x32xf32> to vector<8x32xf32>
    %cst_5 = arith.constant dense<0.000000e+00> : vector<8x8xf32>
    %6 = tpu.matmul %3, %5, %cst_5 {dimension_numbers = #tpu.dot_dimension_numbers<[1], [1], [0], [0], [0, 0, 1, 0], [], []>} : vector<8x32xf32>, vector<8x32xf32>, vector<8x8xf32> -> vector<8x8xf32>
    %7 = tpu.iota {dimensions = array<i32: 0>} : vector<8x8xi32>
    %c8_i32 = arith.constant 8 : i32
    %8 = arith.muli %arg1, %c8_i32 : i32
    %9 = vector.broadcast %8 : i32 to vector<8x8xi32>
    %10 = arith.addi %7, %9 : vector<8x8xi32>
    %11 = tpu.iota {dimensions = array<i32: 1>} : vector<8x8xi32>
    %12 = arith.cmpi sle, %11, %10 : vector<8x8xi32>
    %cst_6 = arith.constant 0xFF800000 : f32
    %13 = vector.broadcast %cst_6 : f32 to vector<8x8xf32>
    %14 = arith.select %12, %6, %13 : vector<8x8xi1>, vector<8x8xf32>
    %cst_7 = arith.constant dense<0xFF800000> : vector<8xf32>
    %15 = vector.multi_reduction <maximumf>, %14, %cst_7 [1] : vector<8x8xf32> to vector<8xf32>
    %16 = vector.shape_cast %15 : vector<8xf32> to vector<8x1xf32>
    %17 = vector.broadcast %16 : vector<8x1xf32> to vector<8x8xf32>
    %18 = arith.subf %14, %17 : vector<8x8xf32>
    %19 = math.exp2 %18 : vector<8x8xf32>
    %cst_8 = arith.constant dense<0.000000e+00> : vector<8xf32>
    %20 = vector.multi_reduction <add>, %19, %cst_8 [1] : vector<8x8xf32> to vector<8xf32>
    %21 = vector.shape_cast %20 : vector<8xf32> to vector<8x1xf32>
    %22 = tpu.reciprocal %21 : vector<8x1xf32> -> vector<8x1xf32>
    %23 = vector.broadcast %22 : vector<8x1xf32> to vector<8x8xf32>
    %24 = arith.mulf %19, %23 : vector<8x8xf32>
    %c0_9 = arith.constant 0 : index
    %c0_10 = arith.constant 0 : index
    %c0_11 = arith.constant 0 : index
    %25 = vector.load %arg4[%c0_9, %c0_10, %c0_11] : memref<1x8x32xf32, #tpu.memory_space<vmem>>, vector<1x8x32xf32>
    %26 = vector.shape_cast %25 : vector<1x8x32xf32> to vector<8x32xf32>
    %cst_12 = arith.constant dense<0.000000e+00> : vector<8x32xf32>
    %27 = tpu.matmul %24, %26, %cst_12 {dimension_numbers = #tpu.dot_dimension_numbers<[1], [0], [0], [1], [0, 0, 1, 1], [], []>} : vector<8x8xf32>, vector<8x32xf32>, vector<8x32xf32> -> vector<8x32xf32>
    %c0_13 = arith.constant 0 : index
    %c0_14 = arith.constant 0 : index
    %c0_15 = arith.constant 0 : index
    %28 = vector.load %arg5[%c0_13, %c0_14, %c0_15] : memref<1x8x32xf32, #tpu.memory_space<vmem>>, vector<1x8x32xf32>
    %29 = vector.shape_cast %28 : vector<1x8x32xf32> to vector<8x32xf32>
    %30 = vector.shape_cast %27 : vector<8x32xf32> to vector<1x8x32xf32>
    tpu.vector_store %arg5[%c0_13, %c0_14, %c0_15], %30 {strides = array<i32>} : memref<1x8x32xf32, #tpu.memory_space<vmem>>, vector<1x8x32xf32>,
    %c0_16 = arith.constant 0 : index
    %c0_17 = arith.constant 0 : index
    %c0_18 = arith.constant 0 : index
    %31 = vector.load %arg6[%c0_16, %c0_17, %c0_18] : memref<1x8x8xf32, #tpu.memory_space<vmem>>, vector<1x8x8xf32>
    %32 = vector.shape_cast %31 : vector<1x8x8xf32> to vector<8x8xf32>
    %33 = vector.shape_cast %24 : vector<8x8xf32> to vector<1x8x8xf32>
    tpu.vector_store %arg6[%c0_16, %c0_17, %c0_18], %33 {strides = array<i32>} : memref<1x8x8xf32, #tpu.memory_space<vmem>>, vector<1x8x8xf32>,
    return
  }
  func.func @transform_0(%arg0: i32, %arg1: i32) -> (i32, i32, i32) {
    %c0_i32 = arith.constant 0 : i32
    %c0_i32_0 = arith.constant 0 : i32
    return %arg0, %arg1, %c0_i32 : i32, i32, i32
  }
  func.func @transform_1(%arg0: i32, %arg1: i32) -> (i32, i32, i32) {
    %c0_i32 = arith.constant 0 : i32
    %c0_i32_0 = arith.constant 0 : i32
    %c0_i32_1 = arith.constant 0 : i32
    return %arg0, %c0_i32, %c0_i32_0 : i32, i32, i32
  }
  func.func @transform_2(%arg0: i32, %arg1: i32) -> (i32, i32, i32) {
    %c0_i32 = arith.constant 0 : i32
    %c0_i32_0 = arith.constant 0 : i32
    %c0_i32_1 = arith.constant 0 : i32
    return %arg0, %c0_i32, %c0_i32_0 : i32, i32, i32
  }
  func.func @transform_3(%arg0: i32, %arg1: i32) -> (i32, i32, i32) {
    %c0_i32 = arith.constant 0 : i32
    %c0_i32_0 = arith.constant 0 : i32
    return %arg0, %arg1, %c0_i32 : i32, i32, i32
  }
  func.func @transform_4(%arg0: i32, %arg1: i32) -> (i32, i32, i32) {
    %c0_i32 = arith.constant 0 : i32
    %c0_i32_0 = arith.constant 0 : i32
    return %arg0, %arg1, %c0_i32 : i32, i32, i32
  }
}

</mosaic_0001>

<bundles_post_ra>
// kernel: tpu_custom_call.1
= control target key start
LH: loop header
LB: loop body
LE: loop exit
PB: predicated region body
PF: predicated region fallthrough
CT: control target
= control target key end

     0   :  { %10 = vsyncpa [#allocation3], 0  ;;  %s1274_s0 = inlined_call_operand.hbm [shape: f32[2,8,32], index: 0, kind: input, shape index: {}]   ;;  %s1275_s1 = inlined_call_operand.hbm [shape: f32[2,8,32], index: 1, kind: input, shape index: {}]   ;;  %s1276_s2 = inlined_call_operand.hbm [shape: f32[2,8,32], index: 2, kind: input, shape index: {}]   ;;  %s1277_s3 = inlined_call_operand.hbm [shape: f32[2,8,32], index: 3, kind: output, shape index: {0}]   ;;  %s1278_s4 = inlined_call_operand.hbm [shape: f32[2,8,8], index: 4, kind: output, shape index: {1}]  }
   0x1   :  { %12 = vsyncpa [#allocation3 + $0x1], 0 }
   0x2   :  { %13 = vsyncpa [#allocation6], 0 }
   0x3   :  { %14 = vsyncpa [#allocation4], 0 }
   0x4   :  { %16 = vsyncpa [#allocation4 + $0x1], 0 }
   0x5   :  { %17 = vsyncpa [#allocation10], 0 }
   0x6   :  { %19 = vsyncpa [#allocation10 + $0x1], 0  ;;  %s991_s15 = smov 0   ;;  %s993_s16 = smov 0  }
   0x7   :  { %s995_s17 = smov 0   ;;  %s997_s18 = smov 0  }
   0x8   :  { %s999_s19 = smov 0   ;;  %s1001_s20 = smov 0  }
   0x9 LB: > { %s628_s21 = sadd.s32 4294967295, %s957_s20   ;;  %s629_s22 = sadd.s32 4294967294, %s957_s20   ;;  %s957_s20 = sphi %s1001_s20, %s25_s20   ;;  %s953_s19 = sphi %s999_s19, %s1298_s19   ;;  %s949_s18 = sphi %s997_s18, %s1297_s18   ;;  %s945_s17 = sphi %s995_s17, %s1296_s17   ;;  %s941_s16 = sphi %s993_s16, %s1295_s16   ;;  %s937_s15 = sphi %s991_s15, %s1294_s15  }
   0xa   : > { %p59_p0 = scmp.ne.s32.totalorder %s941_s16, %s937_s15  ;;  %p60_p1 = scmp.eq.s32.totalorder %s628_s21, 0 }
   0xb   : > { %p1023_p2 = scmp.eq.s32.totalorder %s628_s21, 1  ;;  %p143_p3 = scmp.eq.s32.totalorder %s629_s22, 1 }
   0xc   : > { %p1027_p4 = por %p60_p1, %p59_p0  ;;  %p630_p5 = scmp.ge.s32.totalorder %s957_s20, 1 }
   0xd   : > { %s1282_s23 = scalar_select %p1023_p2, 1, 0 }
   0xe   : > { %s1283_s24 = scalar_select %p1027_p4, 1, 0 }
   0xf   : > { %p1032_p6 = por %p143_p3, %p59_p0  ;;  %p178_p7 = scmp.lt.s32.totalorder %s957_s20, 3 }
  0x10   : > { %s1037_s26 = sshll.u32 %s949_s18, 7  ;;  %s959_s5 = smov [#allocation5]  }
  0x11   : > { %s1284_s25 = scalar_select %p1032_p6, 1, 0 }
  0x12   : > { %p1039_p8 = pnand %p630_p5, %p178_p7  ;;  %s1047_s30 = scalar_lea.hbm %s1275_s1, %s1037_s26 }
  0x13   : > { %s193_s6 = sshll.u32 %s959_s5, 4  ;;  %s1056_s9 = scalar_lea.hbm %s1276_s2, %s1037_s26  ;;  %s194_s6 = int_to_ptr.vmem [resolvable:$true] %s193_s6 }
  0x14   : > { %s1285_s27 = scalar_select %p1039_p8, 1, 0 }
  0x15   : > { %p673_p10 = pneg %p1039_p8  ;;  %s960_s11 = smov [#allocation7]  }
  0x16   : > { %s206_s12 = sshll.u32 %s960_s11, 4  ;;  %s749_s13 = scalar_lea.hbm %s1047_s30, 128  ;;  %s1064_s12 = int_to_ptr.vmem [resolvable:$true] %s206_s12 }
  0x17   : > { %p1060_p11 = pnand %p673_p10, %p1027_p4  ;;  %p750_p12 = scmp.ne.s32.totalorder %s1047_s30, %s749_s13 }
  0x18   : > { %s754_s21 = scalar_lea.hbm %s1275_s1, 256  ;;  %p755_p3 = scmp.lt.u32.totalorder %s1047_s30, %s1275_s1 }
  0x19   : > { %p751_p13 = pneg %p1060_p11  ;;  %p756_p5 = scmp.lt.u32.totalorder %s754_s21, %s749_s13 }
  0x1a   : > { %p758_p10 = scmp.lt.u32.totalorder %s749_s13, %s1047_s30 }
  0x1b   : > { %p752_p0 = pnand %p751_p13, %p750_p12  ;;  %p757_p7 = por %p756_p5, %p755_p3 }
  0x1d   : > { %p753_p1 = pneg %p752_p0  ;;  %p759_p9 = por %p758_p10, %p757_p7 }
  0x1f   : > { %p760_p6 = pnand %p759_p9, %p753_p1 }
  0x21   : > { %763 = shalt.err (!%p760_p6)
}
  0x22   : > { %s764_s29 = scalar_lea.vmem %s194_s6, 128  ;;  %p772_p8 = scmp.lt.s32.totalorder %s194_s6, %s194_s6 }
  0x23   : > { %p765_p4 = scmp.ne.s32.totalorder %s194_s6, %s764_s29  ;;  %p773_p2 = scmp.lt.s32.totalorder %s764_s29, %s764_s29 }
  0x25   : > { %p767_p12 = pnand %p765_p4, %p751_p13  ;;  %p774_p3 = por %p773_p2, %p772_p8 }
  0x27   : > { %p768_p0 = pneg %p767_p12 }
  0x29   : > { %p775_p5 = pnand %p774_p3, %p768_p0 }
  0x2b   : > { %778 = shalt.err (!%p775_p5)
}
  0x2c   : > { %676 = dma.hbm_to_vmem [thread:$0]  (!%p1060_p11), %s1047_s30, 128, %s194_s6, [#allocation6]  }
  0x2d   : > { %s779_s5 = scalar_lea.hbm %s1056_s9, 128  ;;  %s784_s11 = scalar_lea.hbm %s1276_s2, 256 }
  0x2e   : > { %p780_p6 = scmp.ne.s32.totalorder %s1056_s9, %s779_s5  ;;  %p785_p2 = scmp.lt.u32.totalorder %s1056_s9, %s1276_s2 }
  0x2f   : > { %p786_p8 = scmp.lt.u32.totalorder %s784_s11, %s779_s5  ;;  %p788_p7 = scmp.lt.u32.totalorder %s779_s5, %s1056_s9 }
  0x30   : > { %p782_p4 = pnand %p780_p6, %p751_p13 }
  0x31   : > { %p787_p1 = por %p786_p8, %p785_p2 }
  0x32   : > { %p783_p9 = pneg %p782_p4 }
  0x33   : > { %p789_p10 = por %p788_p7, %p787_p1 }
  0x35   : > { %p790_p12 = pnand %p789_p10, %p783_p9 }
  0x37   : > { %793 = shalt.err (!%p790_p12)
}
  0x38   : > { %s794_s30 = scalar_lea.vmem %s1064_s12, 128  ;;  %p802_p6 = scmp.lt.s32.totalorder %s1064_s12, %s1064_s12 }
  0x39   : > { %p795_p0 = scmp.ne.s32.totalorder %s1064_s12, %s794_s30  ;;  %p803_p4 = scmp.lt.s32.totalorder %s794_s30, %s794_s30 }
  0x3b   : > { %p797_p3 = pnand %p795_p0, %p751_p13  ;;  %p804_p2 = por %p803_p4, %p802_p6 }
  0x3d   : > { %p798_p5 = pneg %p797_p3 }
  0x3f   : > { %p805_p8 = pnand %p804_p2, %p798_p5 }
  0x41   : > { %808 = shalt.err (!%p805_p8)
}
  0x42   : > { %679 = dma.hbm_to_vmem [thread:$0]  (!%p1060_p11), %s1056_s9, 128, %s1064_s12, [#allocation6]  }
  0x43   : > { %s37_s6 = sadd.s32 1, %s953_s19  ;;  %s46_s18 = sadd.s32 1, %s945_s17 }
  0x44   : > { %p39_p13 = scmp.ge.s32.totalorder %s37_s6, 2  ;;  %p53_p9 = scmp.ne.s32.totalorder %s945_s17, %s941_s16 }
  0x45   : > { %p54_p1 = scmp.eq.s32.totalorder %s957_s20, 0  ;;  %p691_p7 = scmp.lt.s32.totalorder %s957_s20, 2 }
  0x46   : > { %s1300_s6 = smov (%p39_p13, %s37_s6), 0  ;;  %p1287_p12 = scmp.ne.s32.totalorder %s1282_s23, 0 }
  0x47   : > { %p55_p10 = por %p54_p1, %p53_p9  ;;  %s41_s21 = ssub.s32 %s953_s19, %s1300_s6 }
  0x48   : > { %p1121_p0 = por %p1287_p12, %p53_p9  ;;  %s217_s22 = sand.u32 1, %s945_s17  }
  0x49   : > { %p44_p3 = scmp.eq.s32.totalorder %s41_s21, 0  ;;  %s634_s9 = sshll.u32 %s217_s22, 3 }
  0x4a   : > { %s635_s12 = sshll.u32 %s953_s19, 7  ;;  %s221_s23 = scalar_lea.vmem [#allocation2], %s634_s9 }
  0x4b   : > { %s1130_s28 = scalar_select %p44_p3, %s945_s17, %s46_s18  }
  0x4c   : > { %s1135_s7 = scalar_lea.hbm %s1274_s0, %s635_s12  ;;  %s229_s8 = sshll.u32 %s221_s23, 4  ;;  %s1143_s8 = int_to_ptr.vmem [resolvable:$true] %s229_s8 }
  0x4d   : > { %p1139_p11 = pnand %p691_p7, %p55_p10  ;;  %s218_s13 = scalar_lea.sflag [#allocation3], %s217_s22 }
  0x4e   : > { %s809_s14 = scalar_lea.hbm %s1135_s7, 128  ;;  %s814_s21 = scalar_lea.hbm %s1274_s0, 256 }
  0x4f   : > { %p810_p5 = scmp.ne.s32.totalorder %s1135_s7, %s809_s14  ;;  %p811_p6 = pneg %p1139_p11 }
  0x50   : > { %p815_p8 = scmp.lt.u32.totalorder %s1135_s7, %s1274_s0  ;;  %p816_p13 = scmp.lt.u32.totalorder %s814_s21, %s809_s14 }
  0x51   : > { %p812_p4 = pnand %p811_p6, %p810_p5  ;;  %p818_p1 = scmp.lt.u32.totalorder %s809_s14, %s1135_s7 }
  0x52   : > { %p817_p9 = por %p816_p13, %p815_p8 }
  0x53   : > { %p813_p2 = pneg %p812_p4 }
  0x54   : > { %p819_p7 = por %p818_p1, %p817_p9 }
  0x56   : > { %p820_p10 = pnand %p819_p7, %p813_p2 }
  0x58   : > { %823 = shalt.err (!%p820_p10)
}
  0x59   : > { %s824_s22 = scalar_lea.vmem %s1143_s8, 128  ;;  %s961_s29 = smov [#allocation2]  }
  0x5a   : > { %p825_p12 = scmp.ne.s32.totalorder %s1143_s8, %s824_s22  ;;  %s829_s5 = sshll.u32 %s961_s29, 4  ;;  %s830_s5 = int_to_ptr.vmem [resolvable:$false] %s829_s5 }
  0x5b   : > { %s831_s23 = scalar_lea.vmem %s830_s5, 256  ;;  %p832_p4 = scmp.lt.s32.totalorder %s1143_s8, %s830_s5 }
  0x5c   : > { %p827_p3 = pnand %p825_p12, %p811_p6  ;;  %p833_p8 = scmp.lt.s32.totalorder %s831_s23, %s824_s22 }
  0x5e   : > { %p828_p5 = pneg %p827_p3  ;;  %p834_p13 = por %p833_p8, %p832_p4 }
  0x60   : > { %p835_p9 = pnand %p834_p13, %p828_p5 }
  0x62   : > { %838 = shalt.err (!%p835_p9)
}
  0x63   : > { %683 = dma.hbm_to_vmem [thread:$0]  (!%p1139_p11), %s1135_s7, 128, %s1143_s8, %s218_s13  }
  0x64   : > { %p1290_p2 = scmp.ne.s32.totalorder %s1285_s27, 0 }
  0x65   : > { %s1173_s14 = sand.u32 (!%p1290_p2), 1, %s941_s16   ;;  %p1291_p6 = scmp.ne.s32.totalorder (!%p1290_p2), %s1283_s24, 0 }
  0x66   : > { %238 = sbr.rel (%p1290_p2) target bundleno = 869 (0x365), region = 32  ;;  %s1176_s30 = sshll.u32 (!%p1290_p2), %s1173_s14, 3 }
  0x67   : > { %s241_s18 = scalar_lea.sflag (!%p1290_p2), [#allocation3], %s1173_s14  ;;  %s244_s21 = scalar_lea.vmem (!%p1290_p2), [#allocation2], %s1176_s30 }
  0x6d   : > { %920 = dma.done.wait (%p1291_p6), %s241_s18, 128  }
  0x6e   : > { %922 = vsyncadd (%p1291_p6), %s241_s18, 4294967168 }
  0x6f   : > { %924 = dma.done.wait (%p1291_p6), [#allocation6], 256  }
  0x70   : > { %926 = vsyncadd (%p1291_p6), [#allocation6], 4294967040  ;;  %v962_v0 = vmov 0.0   ;;  %vm963_vm0 = vmmov 0   ;;  %vm285_vm1 = vcmask 261120   ;;  %v284_v1 = vld [vmem:[#allocation5] sm:$0xff]  ;;  %v362_v4 = vlaneseq  ;;  %s1199_s11 = scalar_lea.hbm %s1278_s4, %s1037_s26 }
  0x71   : > { %653 = vmatprep.subr.mxu0 %v962_v0  ;;  %655 = vmatprep.mubr.msk.f32.mxu0 %vm963_vm0, %v962_v0  ;;  %v282_v2 = vld [vmem:[%s244_s21] sm:$0xff]  ;;  %vm371_vm3 = vcmask 64512   ;;  %v382_v15 = vld [vmem:[#allocation7] sm:$0xff]  ;;  %s281_s24 = scalar_lea.vmem [#allocation9], %s1176_s30  ;;  %s464_s13 = scalar_lea.sflag [#allocation10], %s1173_s14 }
  0x72   : > { %658 = vmatprep.subr.mxu1 %v962_v0  ;;  %660 = vmatprep.mubr.msk.f32.mxu1 %vm963_vm0, %v962_v0  ;;  %v283_v3 = vmul.f32 0.25503486, %v282_v2  ;;  %v363_v5 = vshrl.u32 %v362_v4, 7  ;;  %v368_v6 = vand.u32 127, %v362_v4  ;;  %s492_s27 = sshll.u32 %s281_s24, 4  ;;  %s964_s12 = smov [#allocation9]   ;;  %s493_s27 = int_to_ptr.vmem [resolvable:$true] %s492_s27 }
  0x73   : > { %654 = vmatpush3.xpose.msk.msra.mxu0 %vm285_vm1, %v284_v1  ;;  %659 = vmatpush3.msra.mxu1 %v382_v15  ;;  %s839_s9 = scalar_lea.vmem %s493_s27, 128  ;;  %s843_s22 = sshll.u32 %s964_s12, 4  ;;  %s844_s22 = int_to_ptr.vmem [resolvable:$false] %s843_s22 }
  0x74   : > { %vm369_vm2 = vcmp.le.s32.totalorder %v368_v6, %v363_v5  ;;  %p840_p11 = scmp.ne.s32.totalorder %s493_s27, %s839_s9  ;;  %s845_s29 = scalar_lea.vmem %s844_s22, 256 }
  0x75   : > { %p846_p10 = scmp.lt.s32.totalorder %s493_s27, %s844_s22  ;;  %p847_p12 = scmp.lt.s32.totalorder %s845_s29, %s839_s9 }
  0x76   : > { %656 = vmatmul.mubr.msk.f32.vlgmr.msra.gmra.mrb[0].mxu0 %vm285_vm1, %v283_v3  ;;  %p841_p1 = pnand %p840_p11, %p1121_p0 }
  0x77   : > { %p848_p3 = por %p847_p12, %p846_p10 }
  0x78   : > { %p842_p7 = pneg %p841_p1 }
  0x7a   : > { %p849_p5 = pnand %p848_p3, %p842_p7 }
 0x149   : > { %v358_v7 = vpop.f32.mrb[0].mxu0 }
 0x14a   : > { %v370_v8 = vsel %vm369_vm2, %v358_v7, -inf  ;;  %v657_v9 = vpop.f32.mrb[1].mxu0 }
 0x14b   : > { %v372_v10 = vsel %vm371_vm3, %v370_v8, -inf }
 0x14c   : > { %373 = vmax.xlane.f32.xlu0 %v372_v10 }
 0x1d9   : > { %v374_v11 = vpop.xlane.xlu0 %373 }
 0x1da   : > { %v375_v12 = vsub.f32 %v370_v8, %v374_v11 }
 0x1dc   : > { %745 = vpow2.f32 %v375_v12 }
 0x1e6   : > { %v746_v13 = vpop.eup %745 }
 0x1e7   : > { %v377_v14 = vsel %vm371_vm3, %v746_v13, 0.0 }
 0x1e8   : > { %378 = vadd.xlane.f32.xlu0 %v377_v14 }
 0x275   : > { %v379_v16 = vpop.xlane.xlu0 %378 }
 0x276   : > { %747 = vrcp.f32 %v379_v16 }
 0x280   : > { %v748_v17 = vpop.eup %747 }
 0x281   : > { %v381_v18 = vmul.f32 %v748_v17, %v746_v13 }
 0x283   : > { %661 = vmatmul.mubr.msk.f32.vlgmr.msra.gmra.mrb[0].mxu1 %vm371_vm3, %v381_v18  ;;  %457 = vst.msk [vmem:[%s281_s24] sm:$0xff] %vm371_vm3, %v381_v18 }
 0x284   : > { %852 = shalt.err (!%p849_p5)
}
 0x285   : > { %s853_s5 = scalar_lea.hbm %s1199_s11, 128  ;;  %s857_s21 = scalar_lea.hbm %s1278_s4, 256 }
 0x286   : > { %p854_p4 = scmp.ne.s32.totalorder %s1199_s11, %s853_s5  ;;  %p858_p9 = scmp.lt.u32.totalorder %s1199_s11, %s1278_s4 }
 0x287   : > { %p859_p2 = scmp.lt.u32.totalorder %s857_s21, %s853_s5  ;;  %p861_p11 = scmp.lt.u32.totalorder %s853_s5, %s1199_s11 }
 0x288   : > { %p855_p8 = pnand %p854_p4, %p1121_p0 }
 0x289   : > { %p860_p6 = por %p859_p2, %p858_p9 }
 0x28a   : > { %p856_p13 = pneg %p855_p8 }
 0x28b   : > { %p862_p1 = por %p861_p11, %p860_p6 }
 0x28d   : > { %p863_p7 = pnand %p862_p1, %p856_p13 }
 0x28f   : > { %866 = shalt.err (!%p863_p7)
}
 0x290   : > { %670 = dma.vmem_to_hbm [thread:$0]  (%p1121_p0), %s493_s27, 128, %s1199_s11, %s464_s13  }
 0x291   : > { %s274_s8 = scalar_lea.vmem [#allocation8], %s1176_s30  ;;  %s1224_s29 = scalar_lea.hbm %s1277_s3, %s1037_s26 }
 0x292   : > { %s478_s9 = sshll.u32 %s274_s8, 4  ;;  %s459_s5 = scalar_lea.sflag [#allocation4], %s1173_s14  ;;  %s1226_s9 = int_to_ptr.vmem [resolvable:$true] %s478_s9 }
 0x293   : > { %s867_s23 = scalar_lea.vmem %s1226_s9, 128  ;;  %s965_s30 = smov [#allocation8]  }
 0x294   : > { %p868_p10 = scmp.ne.s32.totalorder %s1226_s9, %s867_s23  ;;  %s871_s27 = sshll.u32 %s965_s30, 4  ;;  %s872_s27 = int_to_ptr.vmem [resolvable:$false] %s871_s27 }
 0x295   : > { %s873_s26 = scalar_lea.vmem %s872_s27, 256  ;;  %p874_p5 = scmp.lt.s32.totalorder %s1226_s9, %s872_s27 }
 0x296   : > { %p869_p12 = pnand %p868_p10, %p1121_p0  ;;  %p875_p4 = scmp.lt.s32.totalorder %s873_s26, %s867_s23 }
 0x298   : > { %p870_p3 = pneg %p869_p12  ;;  %p876_p8 = por %p875_p4, %p874_p5 }
 0x29a   : > { %p877_p13 = pnand %p876_p8, %p870_p3 }
 0x356   : > { %v452_v19 = vpop.f32.mrb[0].mxu1 }
 0x357   : > { %456 = vst.msk [vmem:[%s274_s8] sm:$0xff] %vm285_vm1, %v452_v19  ;;  %v662_v20 = vpop.f32.mrb[1].mxu1 }
 0x358   : > { %880 = shalt.err (!%p877_p13)
}
 0x359   : > { %s881_s14 = scalar_lea.hbm %s1224_s29, 128  ;;  %s885_s18 = scalar_lea.hbm %s1277_s3, 256 }
 0x35a   : > { %p882_p9 = scmp.ne.s32.totalorder %s1224_s29, %s881_s14  ;;  %p886_p11 = scmp.lt.u32.totalorder %s1224_s29, %s1277_s3 }
 0x35b   : > { %p887_p1 = scmp.lt.u32.totalorder %s885_s18, %s881_s14  ;;  %p889_p10 = scmp.lt.u32.totalorder %s881_s14, %s1224_s29 }
 0x35c   : > { %p883_p2 = pnand %p882_p9, %p1121_p0 }
 0x35d   : > { %p888_p7 = por %p887_p1, %p886_p11 }
 0x35e   : > { %p884_p6 = pneg %p883_p2 }
 0x35f   : > { %p890_p12 = por %p889_p10, %p888_p7 }
 0x361   : > { %p891_p3 = pnand %p890_p12, %p884_p6 }
 0x363   : > { %894 = shalt.err (!%p891_p3)
}
 0x364   : > { %669 = dma.vmem_to_hbm [thread:$0]  (%p1121_p0), %s1226_s9, 128, %s1224_s29, %s459_s5  }
 0x365 PF: > { %s504_s7 = sand.u32 1, %s937_s15   ;;  %p1292_p5 = scmp.ne.s32.totalorder %s1284_s25, 0 }
 0x366   : > { %p1293_p4 = scmp.ge.s32.totalorder %s957_s20, 2  ;;  %s505_s8 = scalar_lea.sflag [#allocation4], %s504_s7 }
 0x368   : > { %p685_p8 = pnand %p1293_p4, %p1292_p5 }
 0x36a   : > { %928 = dma.done.wait (!%p685_p8), %s505_s8, 128  }
 0x36b   : > { %930 = vsyncadd (!%p685_p8), %s505_s8, 4294967168  ;;  %s514_s12 = scalar_lea.sflag [#allocation10], %s504_s7 }
 0x36c   : > { %932 = dma.done.wait (!%p685_p8), %s514_s12, 128  }
 0x36d   : > { %934 = vsyncadd (!%p685_p8), %s514_s12, 4294967168  ;;  %s25_s20 = sadd.s32 1, %s957_s20   ;;  %s1294_s15 = smov %s941_s16 }
 0x36e   : > { %p22_p13 = scmp.ge.s32.totalorder %s25_s20, 4   ;;  %s1295_s16 = smov %s945_s17 }
 0x36f   : > { %s1296_s17 = smov %s1130_s28  ;;  %s1297_s18 = smov %s953_s19 }
 0x370   : > { %s1298_s19 = smov %s1300_s6  ;;  %24 = sbr.rel (!%p22_p13) target bundleno = 9 (0x9), region = 104 }
 0x377   :  { %519 = vsyncpa [#allocation3], 1 }
 0x378   :  { %521 = vsyncpa [#allocation3 + $0x1], 1 }
 0x379   :  { %522 = vsyncpa [#allocation6], 1 }
 0x37a   :  { %523 = vsyncpa [#allocation4], 1 }
 0x37b   :  { %525 = vsyncpa [#allocation4 + $0x1], 1 }
 0x37c   :  { %526 = vsyncpa [#allocation10], 1 }
 0x37d   :  { %528 = vsyncpa [#allocation10 + $0x1], 1 }

</bundles_post_ra>
